<compile_context>
chip_gen: v7x
topology: tpu7x:2x2x1
jax: 0.10.0
libtpu: 0.0.40
codegen_flags: <defaults>
</compile_context>

<pallas_src>
import functools

import jax
import jax.numpy as jnp
from jax.experimental import pallas as pl
from jax.experimental.pallas import tpu as pltpu

_EPS = 1e-8          # torch.nn.functional.cosine_similarity default eps
_MIB = 1 << 20


# --------------------------------------------------------------------------- #
# Hardware-aware sizing helpers
# --------------------------------------------------------------------------- #
def _tpu_platform_info():
    """Returns (physical VMEM bytes, is_v7x_like) with safe fallbacks."""
    is_v7x = False
    try:
        kind = jax.devices()[0].device_kind.lower()
        is_v7x = ("v7" in kind) or ("7x" in kind)
    except Exception:
        pass
    try:
        vmem = int(pltpu.get_tpu_info().vmem_capacity_bytes)
    except Exception:
        # Conservative fallbacks: 64 MiB per TC on v7x, 128 MiB otherwise.
        vmem = 64 * _MIB if is_v7x else 128 * _MIB
    if not is_v7x:
        # Secondary heuristic if device_kind was unavailable.
        is_v7x = vmem <= 64 * _MIB
    return vmem, is_v7x


def _choose_tile_b(batch, dim, itemsize, vmem_capacity):
    """Largest batch tile whose 4x double-buffered input blocks fit the budget."""
    granule = 16 if itemsize < 4 else 8        # bf16 packs 2 rows per sublane
    input_budget = (3 * vmem_capacity) // 8    # ~37.5% of physical for inputs
    per_row = 4 * 2 * dim * itemsize           # 4 streams x 2 pipeline buffers
    tb = input_budget // max(per_row, 1)
    tb = min(tb, 1024)                         # >1024 rows: past roofline plateau
    if tb >= batch:
        return int(batch)                      # single full-extent block
    tb = max(granule, (tb // granule) * granule)
    return int(min(tb, batch))


def _vmem_limit_bytes(tb, dim, itemsize, vmem_capacity):
    """Explicit scoped-VMEM limit: inputs + f32 working set + headroom."""
    inputs = 4 * 2 * tb * dim * itemsize       # double-buffered input blocks
    work = 6 * tb * dim * 4                    # f32 upcasts/products upper bound
    needed = inputs + work + 16 * _MIB
    return int(min(vmem_capacity, 128 * _MIB, max(needed, 32 * _MIB)))


# --------------------------------------------------------------------------- #
# Kernel
# --------------------------------------------------------------------------- #
def _sym_neg_cos_kernel(p0_ref, z1_ref, p1_ref, z0_ref, out_ref, *,
                        batch, tile_b, blocks_per_part, needs_mask, upcast):
    """Accumulates sum_rows[ cos(p0,z1) + cos(p1,z0) ] for this part.

    Grid = (num_parts, blocks_per_part):
      axis 0 ("parallel"): independent partial sums (one per TensorCore on v7x)
      axis 1 ("arbitrary"): reduction over batch tiles
    out_ref is a (1, 8, 128) VMEM block holding this part's partial sum
    replicated across all elements (lane/sublane-aligned accumulator).
    """
    part = pl.program_id(0)
    j = pl.program_id(1)

    @pl.when(j == 0)
    def _init():
        out_ref[...] = jnp.zeros_like(out_ref)

    p0 = p0_ref[...]
    z1 = z1_ref[...]
    p1 = p1_ref[...]
    z0 = z0_ref[...]

    def _cos_rows(x, y):
        # per-row cosine similarity: (x . y) / max(||x|| * ||y||, eps)
        if upcast:
            # Streaming bf16 from HBM halves bytes moved; the cast is VPU work
            # hidden under the DMA (v5e/v6e path).
            x = x.astype(jnp.float32)
            y = y.astype(jnp.float32)
        # On v7x (upcast=False for bf16) the products stay in bf16 on the
        # native bf16 VALU; lane-reductions accumulate in f32 either way.
        num = jnp.sum(x * y, axis=-1, keepdims=True, dtype=jnp.float32)
        nx2 = jnp.sum(x * x, axis=-1, keepdims=True, dtype=jnp.float32)
        ny2 = jnp.sum(y * y, axis=-1, keepdims=True, dtype=jnp.float32)
        # rsqrt(max(nx2*ny2, eps^2)) == 1 / max(||x||*||y||, eps); single EUP op
        inv = jax.lax.rsqrt(jnp.maximum(nx2 * ny2, jnp.float32(_EPS * _EPS)))
        return num * inv

    c = _cos_rows(p0, z1) + _cos_rows(p1, z0)           # (tile_b, 1)

    if needs_mask:
        # Mask rows past the end of the batch: covers the ragged last tile and
        # any clamped duplicate blocks from the parallel split. Use where (not
        # a multiply) so garbage NaN/Inf in padded rows cannot leak in.
        blk = part * blocks_per_part + j
        row = blk * tile_b + jax.lax.broadcasted_iota(jnp.int32, (tile_b, 1), 0)
        c = jnp.where(row < batch, c, 0.0)

    # Accumulate this part's partial sum (scalar broadcast over the block).
    out_ref[...] += jnp.sum(c)


# --------------------------------------------------------------------------- #
# Wrapper
# --------------------------------------------------------------------------- #
def sym_neg_cosine_similarity_loss(out0, out1, *, tile_b=None, num_parts=None,
                                   low_precision_products=None,
                                   force_pallas=False):
    """JAX/Pallas equivalent of SymNegCosineSimilarityLoss.forward.

    Args:
        out0: tuple (z0, p0), each of shape (B, D).
        out1: tuple (z1, p1), each of shape (B, D).
        tile_b: batch tile size; None -> auto-sized from the device's VMEM
            capacity (largest double-buffered tile within ~37.5% of physical,
            capped at 1024 rows).
        num_parts: number of independent partial sums ("parallel" grid axis).
            None -> 2 on v7x (two TensorCores), 1 on single-TC chips.
        low_precision_products: keep bf16 elementwise products (f32 accumulate)
            instead of upcasting tiles. None -> auto (only on v7x with bf16).
        force_pallas: bypass the tiny-problem jnp fallback.
    Returns:
        scalar float32 loss.
    """
    z0, p0 = out0
    z1, p1 = out1
    B, D = p0.shape
    dtype = p0.dtype
    itemsize = jnp.dtype(dtype).itemsize

    # Tiny / lane-starved problems: pallas_call launch + DMA setup costs more
    # than the XLA-fused jnp version, and D < 128 under-fills the vreg lanes.
    if not force_pallas and (D < 128 or B < 8):
        f32 = lambda a: a.astype(jnp.float32)
        return _reference((f32(z0), f32(p0)), (f32(z1), f32(p1)))

    vmem_capacity, is_v7x = _tpu_platform_info()

    # Parallel split only pays off with >1 TensorCore; on v5e/v6e it just adds
    # a second accumulator block and possibly a wasted clamped duplicate tile.
    if num_parts is None:
        num_parts = 2 if is_v7x else 1

    # Batch tile: granule 16 rows for bf16 (2 rows/sublane packing), else 8.
    granule = 16 if itemsize < 4 else 8
    if tile_b is None:
        tb = _choose_tile_b(B, D, itemsize, vmem_capacity)
    else:
        tb = min(int(tile_b), B)
        if tb != B:
            tb = max(granule, (tb // granule) * granule)

    nblocks = pl.cdiv(B, tb)
    num_parts = max(1, min(num_parts, nblocks))
    blocks_per_part = pl.cdiv(nblocks, num_parts)
    needs_mask = (B % tb != 0) or (num_parts * blocks_per_part != nblocks)

    if low_precision_products is None:
        low_precision_products = bool(is_v7x) and dtype == jnp.bfloat16
    upcast = not low_precision_products

    def in_map(p, j):
        # Clamp so overhang blocks of the parallel split stay in-bounds; their
        # rows are masked out inside the kernel.
        blk = jnp.minimum(p * blocks_per_part + j, nblocks - 1)
        return (blk, 0)

    in_spec = pl.BlockSpec((tb, D), in_map)
    # (8, 128)-aligned per-part accumulator, resident across the reduction axis.
    out_spec = pl.BlockSpec((1, 8, 128), lambda p, j: (p, 0, 0))

    kernel = functools.partial(
        _sym_neg_cos_kernel, batch=B, tile_b=tb,
        blocks_per_part=blocks_per_part, needs_mask=needs_mask, upcast=upcast)

    cost = pl.CostEstimate(
        flops=12 * B * D,                      # 3 dot-like reductions per pair
        transcendentals=2 * B,                 # one rsqrt per pair per row
        bytes_accessed=4 * B * D * itemsize + num_parts * 8 * 128 * 4,
    )

    partials = pl.pallas_call(
        kernel,
        out_shape=jax.ShapeDtypeStruct((num_parts, 8, 128), jnp.float32),
        grid=(num_parts, blocks_per_part),
        in_specs=[in_spec, in_spec, in_spec, in_spec],
        out_specs=out_spec,
        compiler_params=pltpu.CompilerParams(
            dimension_semantics=("parallel", "arbitrary"),
            vmem_limit_bytes=_vmem_limit_bytes(tb, D, itemsize, vmem_capacity)),
        cost_estimate=cost,
    )(p0, z1, p1, z0)

    # Final reduction + scale in the thin wrapper: loss = -(mean01 + mean10)/2.
    total = jnp.sum(partials[:, 0, 0])
    return (-0.5 / B) * total


def _reference(out0, out1):
    """Pure-jnp reference (also used as the tiny-problem fallback)."""
    z0, p0 = out0
    z1, p1 = out1

    def neg_cos(x, y):
        y = jax.lax.stop_gradient(y)  # matches .detach() in the PyTorch loss
        num = jnp.sum(x * y, axis=-1)
        nx = jnp.sqrt(jnp.sum(x * x, axis=-1))
        ny = jnp.sqrt(jnp.sum(y * y, axis=-1))
        return -jnp.mean(num / jnp.maximum(nx * ny, _EPS))

    return neg_cos(p0, z1) / 2 + neg_cos(p1, z0) / 2


if __name__ == "__main__":
    key = jax.random.PRNGKey(0)
    ks = jax.random.split(key, 8)

    B, D = 24, 128
    z0 = jax.random.normal(ks[0], (B, D), dtype=jnp.float32)
    p0 = jax.random.normal(ks[1], (B, D), dtype=jnp.float32)
    z1 = jax.random.normal(ks[2], (B, D), dtype=jnp.float32)
    p1 = jax.random.normal(ks[3], (B, D), dtype=jnp.float32)
    ref = _reference((z0, p0), (z1, p1))

    # Case 0: fully automatic sizing (tb == B -> one full-extent block, mask
    # skipped statically, VMEM limit & num_parts derived from the device).
    loss0 = jax.block_until_ready(
        sym_neg_cosine_similarity_loss((z0, p0), (z1, p1)))
    assert jnp.allclose(loss0, ref, atol=1e-5, rtol=1e-4), (loss0, ref)

    # Case 1: forced multi-tile + 2-part split (tile_b=8 -> 3 real blocks plus
    # 1 clamped/masked duplicate block on the parallel axis).
    loss1 = jax.block_until_ready(
        sym_neg_cosine_similarity_loss((z0, p0), (z1, p1), tile_b=8,
                                       num_parts=2))
    assert jnp.allclose(loss1, ref, atol=1e-5, rtol=1e-4), (loss1, ref)

    # Case 2: bf16 streaming inputs with a ragged last tile (B=24, tile_b=16).
    zb0, pb0, zb1, pb1 = (a.astype(jnp.bfloat16) for a in (z0, p0, z1, p1))
    loss_bf16 = jax.block_until_ready(
        sym_neg_cosine_similarity_loss((zb0, pb0), (zb1, pb1), tile_b=16))
    ref_bf16 = _reference(
        (zb0.astype(jnp.float32), pb0.astype(jnp.float32)),
        (zb1.astype(jnp.float32), pb1.astype(jnp.float32)))
    assert jnp.allclose(loss_bf16, ref_bf16, atol=5e-3, rtol=5e-3), (
        loss_bf16, ref_bf16)

    # Case 3: tiny / lane-starved shape takes the plain-jnp fallback path.
    Bt, Dt = 8, 32
    zt0 = jax.random.normal(ks[4], (Bt, Dt), dtype=jnp.float32)
    pt0 = jax.random.normal(ks[5], (Bt, Dt), dtype=jnp.float32)
    zt1 = jax.random.normal(ks[6], (Bt, Dt), dtype=jnp.float32)
    pt1 = jax.random.normal(ks[7], (Bt, Dt), dtype=jnp.float32)
    loss_t = jax.block_until_ready(
        sym_neg_cosine_similarity_loss((zt0, pt0), (zt1, pt1)))
    ref_t = _reference((zt0, pt0), (zt1, pt1))
    assert jnp.allclose(loss_t, ref_t, atol=1e-5, rtol=1e-4), (loss_t, ref_t)

    print("KERNEL_OK")
</pallas_src>

<mosaic_0001>
module attributes {stable_mosaic.version = 11 : i64} {
  func.func @_sym_neg_cos_kernel(%arg0: i32, %arg1: i32, %arg2: memref<24x128xf32, #tpu.memory_space<vmem>>, %arg3: memref<24x128xf32, #tpu.memory_space<vmem>>, %arg4: memref<24x128xf32, #tpu.memory_space<vmem>>, %arg5: memref<24x128xf32, #tpu.memory_space<vmem>>, %arg6: memref<1x8x128xf32, #tpu.memory_space<vmem>>) attributes {dimension_semantics = [#tpu.dimension_semantics<parallel>, #tpu.dimension_semantics<arbitrary>], iteration_bounds = array<i64: 1, 1>, scalar_prefetch = 0 : i64, scratch_operands = 0 : i64, tpu.core_type = #tpu.core_type<tc>, window_params = [{transform_indices = @transform_0, window_bounds = array<i64: 24, 128>}, {transform_indices = @transform_1, window_bounds = array<i64: 24, 128>}, {transform_indices = @transform_2, window_bounds = array<i64: 24, 128>}, {transform_indices = @transform_3, window_bounds = array<i64: 24, 128>}, {transform_indices = @transform_4, window_bounds = array<i64: 1, 8, 128>}]} {
    %c0_i32 = arith.constant 0 : i32
    %0 = arith.cmpi eq, %arg1, %c0_i32 : i32
    %1 = arith.extui %0 : i1 to i32
    %c0_i32_0 = arith.constant 0 : i32
    %2 = arith.cmpi ne, %1, %c0_i32_0 : i32
    scf.if %2 {
      %cst_22 = arith.constant 0.000000e+00 : f32
      %44 = vector.broadcast %cst_22 : f32 to vector<1x8x128xf32>
      %c0_23 = arith.constant 0 : index
      %c0_24 = arith.constant 0 : index
      %c0_25 = arith.constant 0 : index
      %45 = vector.load %arg6[%c0_23, %c0_24, %c0_25] : memref<1x8x128xf32, #tpu.memory_space<vmem>>, vector<1x8x128xf32>
      tpu.vector_store %arg6[%c0_23, %c0_24, %c0_25], %44 {strides = array<i32>} : memref<1x8x128xf32, #tpu.memory_space<vmem>>, vector<1x8x128xf32>,
    } else {
    }
    %c0 = arith.constant 0 : index
    %c0_1 = arith.constant 0 : index
    %3 = vector.load %arg2[%c0, %c0_1] : memref<24x128xf32, #tpu.memory_space<vmem>>, vector<24x128xf32>
    %c0_2 = arith.constant 0 : index
    %c0_3 = arith.constant 0 : index
    %4 = vector.load %arg3[%c0_2, %c0_3] : memref<24x128xf32, #tpu.memory_space<vmem>>, vector<24x128xf32>
    %c0_4 = arith.constant 0 : index
    %c0_5 = arith.constant 0 : index
    %5 = vector.load %arg4[%c0_4, %c0_5] : memref<24x128xf32, #tpu.memory_space<vmem>>, vector<24x128xf32>
    %c0_6 = arith.constant 0 : index
    %c0_7 = arith.constant 0 : index
    %6 = vector.load %arg5[%c0_6, %c0_7] : memref<24x128xf32, #tpu.memory_space<vmem>>, vector<24x128xf32>
    %7 = arith.mulf %3, %4 : vector<24x128xf32>
    %cst = arith.constant dense<0.000000e+00> : vector<24xf32>
    %8 = vector.multi_reduction <add>, %7, %cst [1] : vector<24x128xf32> to vector<24xf32>
    %9 = vector.shape_cast %8 : vector<24xf32> to vector<24x1xf32>
    %10 = arith.mulf %3, %3 : vector<24x128xf32>
    %cst_8 = arith.constant dense<0.000000e+00> : vector<24xf32>
    %11 = vector.multi_reduction <add>, %10, %cst_8 [1] : vector<24x128xf32> to vector<24xf32>
    %12 = vector.shape_cast %11 : vector<24xf32> to vector<24x1xf32>
    %13 = arith.mulf %4, %4 : vector<24x128xf32>
    %cst_9 = arith.constant dense<0.000000e+00> : vector<24xf32>
    %14 = vector.multi_reduction <add>, %13, %cst_9 [1] : vector<24x128xf32> to vector<24xf32>
    %15 = vector.shape_cast %14 : vector<24xf32> to vector<24x1xf32>
    %16 = arith.mulf %12, %15 : vector<24x1xf32>
    %cst_10 = arith.constant 1.000000e-16 : f32
    %17 = vector.broadcast %cst_10 : f32 to vector<24x1xf32>
    %18 = arith.maximumf %16, %17 : vector<24x1xf32>
    %19 = math.rsqrt %18 : vector<24x1xf32>
    %20 = arith.mulf %9, %19 : vector<24x1xf32>
    %21 = arith.mulf %5, %6 : vector<24x128xf32>
    %cst_11 = arith.constant dense<0.000000e+00> : vector<24xf32>
    %22 = vector.multi_reduction <add>, %21, %cst_11 [1] : vector<24x128xf32> to vector<24xf32>
    %23 = vector.shape_cast %22 : vector<24xf32> to vector<24x1xf32>
    %24 = arith.mulf %5, %5 : vector<24x128xf32>
    %cst_12 = arith.constant dense<0.000000e+00> : vector<24xf32>
    %25 = vector.multi_reduction <add>, %24, %cst_12 [1] : vector<24x128xf32> to vector<24xf32>
    %26 = vector.shape_cast %25 : vector<24xf32> to vector<24x1xf32>
    %27 = arith.mulf %6, %6 : vector<24x128xf32>
    %cst_13 = arith.constant dense<0.000000e+00> : vector<24xf32>
    %28 = vector.multi_reduction <add>, %27, %cst_13 [1] : vector<24x128xf32> to vector<24xf32>
    %29 = vector.shape_cast %28 : vector<24xf32> to vector<24x1xf32>
    %30 = arith.mulf %26, %29 : vector<24x1xf32>
    %cst_14 = arith.constant 1.000000e-16 : f32
    %31 = vector.broadcast %cst_14 : f32 to vector<24x1xf32>
    %32 = arith.maximumf %30, %31 : vector<24x1xf32>
    %33 = math.rsqrt %32 : vector<24x1xf32>
    %34 = arith.mulf %23, %33 : vector<24x1xf32>
    %35 = arith.addf %20, %34 : vector<24x1xf32>
    %c0_15 = arith.constant 0 : index
    %c0_16 = arith.constant 0 : index
    %c0_17 = arith.constant 0 : index
    %36 = vector.load %arg6[%c0_15, %c0_16, %c0_17] : memref<1x8x128xf32, #tpu.memory_space<vmem>>, vector<1x8x128xf32>
    %37 = vector.shape_cast %35 : vector<24x1xf32> to vector<1x24x1xf32>
    %cst_18 = arith.constant dense<0.000000e+00> : vector<1xf32>
    %38 = vector.multi_reduction <add>, %37, %cst_18 [1, 2] : vector<1x24x1xf32> to vector<1xf32>
    %39 = vector.shape_cast %38 : vector<1xf32> to vector<1x1x1xf32>
    %40 = vector.extract %39[0, 0, 0] : f32 from vector<1x1x1xf32>
    %41 = vector.broadcast %40 : f32 to vector<1x8x128xf32>
    %42 = arith.addf %36, %41 : vector<1x8x128xf32>
    %c0_19 = arith.constant 0 : index
    %c0_20 = arith.constant 0 : index
    %c0_21 = arith.constant 0 : index
    %43 = vector.load %arg6[%c0_19, %c0_20, %c0_21] : memref<1x8x128xf32, #tpu.memory_space<vmem>>, vector<1x8x128xf32>
    tpu.vector_store %arg6[%c0_19, %c0_20, %c0_21], %42 {strides = array<i32>} : memref<1x8x128xf32, #tpu.memory_space<vmem>>, vector<1x8x128xf32>,
    return
  }
  func.func @transform_0(%arg0: i32, %arg1: i32) -> (i32, i32) {
    %c1_i32 = arith.constant 1 : i32
    %0 = arith.muli %arg0, %c1_i32 : i32
    %1 = arith.addi %0, %arg1 : i32
    %c0_i32 = arith.constant 0 : i32
    %2 = arith.minsi %1, %c0_i32 : i32
    %c0_i32_0 = arith.constant 0 : i32
    %c0_i32_1 = arith.constant 0 : i32
    return %2, %c0_i32_0 : i32, i32
  }
  func.func @transform_1(%arg0: i32, %arg1: i32) -> (i32, i32) {
    %c1_i32 = arith.constant 1 : i32
    %0 = arith.muli %arg0, %c1_i32 : i32
    %1 = arith.addi %0, %arg1 : i32
    %c0_i32 = arith.constant 0 : i32
    %2 = arith.minsi %1, %c0_i32 : i32
    %c0_i32_0 = arith.constant 0 : i32
    %c0_i32_1 = arith.constant 0 : i32
    return %2, %c0_i32_0 : i32, i32
  }
  func.func @transform_2(%arg0: i32, %arg1: i32) -> (i32, i32) {
    %c1_i32 = arith.constant 1 : i32
    %0 = arith.muli %arg0, %c1_i32 : i32
    %1 = arith.addi %0, %arg1 : i32
    %c0_i32 = arith.constant 0 : i32
    %2 = arith.minsi %1, %c0_i32 : i32
    %c0_i32_0 = arith.constant 0 : i32
    %c0_i32_1 = arith.constant 0 : i32
    return %2, %c0_i32_0 : i32, i32
  }
  func.func @transform_3(%arg0: i32, %arg1: i32) -> (i32, i32) {
    %c1_i32 = arith.constant 1 : i32
    %0 = arith.muli %arg0, %c1_i32 : i32
    %1 = arith.addi %0, %arg1 : i32
    %c0_i32 = arith.constant 0 : i32
    %2 = arith.minsi %1, %c0_i32 : i32
    %c0_i32_0 = arith.constant 0 : i32
    %c0_i32_1 = arith.constant 0 : i32
    return %2, %c0_i32_0 : i32, i32
  }
  func.func @transform_4(%arg0: i32, %arg1: i32) -> (i32, i32, i32) {
    %c0_i32 = arith.constant 0 : i32
    %c0_i32_0 = arith.constant 0 : i32
    %c0_i32_1 = arith.constant 0 : i32
    return %arg0, %c0_i32, %c0_i32_0 : i32, i32, i32
  }
}

</mosaic_0001>

<bundles_post_ra>
// kernel: tpu_custom_call.1
= control target key start
LH: loop header
LB: loop body
LE: loop exit
PB: predicated region body
PF: predicated region fallthrough
CT: control target
= control target key end

     0   :  { %9 = vsyncpa [#allocation3], 0  ;;  %s513_s0 = inlined_call_operand.hbm [shape: f32[24,128], index: 0, kind: input, shape index: {}]   ;;  %s514_s1 = inlined_call_operand.hbm [shape: f32[24,128], index: 1, kind: input, shape index: {}]   ;;  %s515_s2 = inlined_call_operand.hbm [shape: f32[24,128], index: 2, kind: input, shape index: {}]   ;;  %s516_s3 = inlined_call_operand.hbm [shape: f32[24,128], index: 3, kind: input, shape index: {}]   ;;  %s517_s4 = inlined_call_operand.hbm [shape: f32[1,8,128], index: 4, kind: output, shape index: {}]  }
   0x1   :  { %10 = vsyncpa [#allocation6], 0 }
   0x2   :  { %11 = vsyncpa [#allocation9], 0 }
   0x3   :  { %12 = vsyncpa [#allocation4], 0  ;;  %s395_s15 = smov [#allocation5]   ;;  %s396_s17 = smov [#allocation2]  }
   0x4   :  { %s42_s16 = sshll.u32 %s395_s15, 4  ;;  %s24_s18 = sshll.u32 %s396_s17, 4  ;;  %s43_s16 = int_to_ptr.vmem [resolvable:$true] %s42_s16  ;;  %s427_s18 = int_to_ptr.vmem [resolvable:$true] %s24_s18 }
   0x5   :  { %s277_s21 = scalar_lea.hbm %s514_s1, 384 }
   0x6   :  { %p278_p0 = scmp.ne.s32.totalorder %s514_s1, %s277_s21  ;;  %p281_p1 = scmp.lt.u32.totalorder %s277_s21, %s514_s1 }
   0x8   :  { %p283_p2 = pnand %p281_p1, %p278_p0 }
   0xa   :  { %286 = shalt.err (!%p283_p2)
}
   0xb   :  { %s287_s26 = scalar_lea.vmem %s43_s16, 384  ;;  %p292_p4 = scmp.lt.s32.totalorder %s43_s16, %s43_s16 }
   0xc   :  { %p288_p3 = scmp.ne.s32.totalorder %s43_s16, %s287_s26  ;;  %p293_p5 = scmp.lt.s32.totalorder %s287_s26, %s287_s26 }
   0xe   :  { %p294_p6 = por %p293_p5, %p292_p4 }
  0x10   :  { %p295_p7 = pnand %p294_p6, %p288_p3 }
  0x12   :  { %298 = shalt.err (!%p295_p7)
}
  0x13   :  { %s397_s27 = smov 128   ;;  %s398_s28 = smov 8  }
  0x14   :  { %48 = dma.hbm_to_vmem [thread:$0]  %s514_s1, 384, %s43_s16, [#allocation6], %s397_s27, %s397_s27, %s398_s28  }
  0x15   :  { %s299_s7 = scalar_lea.hbm %s513_s0, 384 }
  0x16   :  { %p300_p8 = scmp.ne.s32.totalorder %s513_s0, %s299_s7  ;;  %p303_p9 = scmp.lt.u32.totalorder %s299_s7, %s513_s0 }
  0x18   :  { %p305_p10 = pnand %p303_p9, %p300_p8 }
  0x1a   :  { %308 = shalt.err (!%p305_p10)
}
  0x1b   :  { %s309_s12 = scalar_lea.vmem %s427_s18, 384  ;;  %p314_p12 = scmp.lt.s32.totalorder %s427_s18, %s427_s18 }
  0x1c   :  { %p310_p11 = scmp.ne.s32.totalorder %s427_s18, %s309_s12  ;;  %p315_p13 = scmp.lt.s32.totalorder %s309_s12, %s309_s12 }
  0x1e   :  { %p316_p0 = por %p315_p13, %p314_p12 }
  0x20   :  { %p317_p1 = pnand %p316_p0, %p310_p11 }
  0x22   :  { %320 = shalt.err (!%p317_p1)
}
  0x23   :  { %30 = dma.hbm_to_vmem [thread:$0]  %s513_s0, 384, %s427_s18, [#allocation3], %s397_s27, %s397_s27, %s398_s28  }
  0x24   :  { %s399_s14 = smov [#allocation7]   ;;  %s400_s16 = smov [#allocation8]  }
  0x25   :  { %s60_s15 = sshll.u32 %s399_s14, 4  ;;  %s78_s17 = sshll.u32 %s400_s16, 4  ;;  %s61_s15 = int_to_ptr.vmem [resolvable:$true] %s60_s15  ;;  %s464_s17 = int_to_ptr.vmem [resolvable:$true] %s78_s17 }
  0x26   :  { %s321_s21 = scalar_lea.hbm %s515_s2, 384 }
  0x27   :  { %p322_p2 = scmp.ne.s32.totalorder %s515_s2, %s321_s21  ;;  %p325_p3 = scmp.lt.u32.totalorder %s321_s21, %s515_s2 }
  0x29   :  { %p327_p4 = pnand %p325_p3, %p322_p2 }
  0x2b   :  { %330 = shalt.err (!%p327_p4)
}
  0x2c   :  { %s331_s0 = scalar_lea.vmem %s61_s15, 384  ;;  %p336_p6 = scmp.lt.s32.totalorder %s61_s15, %s61_s15 }
  0x2d   :  { %p332_p5 = scmp.ne.s32.totalorder %s61_s15, %s331_s0  ;;  %p337_p7 = scmp.lt.s32.totalorder %s331_s0, %s331_s0 }
  0x2f   :  { %p338_p8 = por %p337_p7, %p336_p6 }
  0x31   :  { %p339_p9 = pnand %p338_p8, %p332_p5 }
  0x33   :  { %342 = shalt.err (!%p339_p9)
}
  0x34   :  { %66 = dma.hbm_to_vmem [thread:$0]  %s515_s2, 384, %s61_s15, [#allocation6], %s397_s27, %s397_s27, %s398_s28  }
  0x35   :  { %s343_s5 = scalar_lea.hbm %s516_s3, 384 }
  0x36   :  { %p344_p10 = scmp.ne.s32.totalorder %s516_s3, %s343_s5  ;;  %p347_p11 = scmp.lt.u32.totalorder %s343_s5, %s516_s3 }
  0x38   :  { %p349_p12 = pnand %p347_p11, %p344_p10 }
  0x3a   :  { %352 = shalt.err (!%p349_p12)
}
  0x3b   :  { %s353_s10 = scalar_lea.vmem %s464_s17, 384  ;;  %p358_p0 = scmp.lt.s32.totalorder %s464_s17, %s464_s17 }
  0x3c   :  { %p354_p13 = scmp.ne.s32.totalorder %s464_s17, %s353_s10  ;;  %p359_p1 = scmp.lt.s32.totalorder %s353_s10, %s353_s10 }
  0x3e   :  { %p360_p2 = por %p359_p1, %p358_p0 }
  0x40   :  { %p361_p3 = pnand %p360_p2, %p354_p13 }
  0x42   :  { %364 = shalt.err (!%p361_p3)
}
  0x43   :  { %84 = dma.hbm_to_vmem [thread:$0]  %s516_s3, 384, %s464_s17, [#allocation9], %s397_s27, %s397_s27, %s398_s28  }
  0x44   :  { %387 = dma.done.wait [#allocation3], 384  }
  0x45   :  { %388 = vsyncadd [#allocation3], 4294966912 }
  0x46   :  { %389 = dma.done.wait [#allocation6], 768  }
  0x47   :  { %390 = vsyncadd [#allocation6], 4294966528 }
  0x48   :  { %391 = dma.done.wait [#allocation9], 384  }
  0x49   :  { %392 = vsyncadd [#allocation9], 4294966912  ;;  %v121_v0 = vld [vmem:[#allocation5] sm:$0xff]  ;;  %v118_v1 = vld [vmem:[#allocation2] sm:$0xff]  ;;  %vm212_vm0 = vcmask 7168   ;;  %s401_s3 = smov [#allocation10]  }
  0x4a   :  { %v122_v2 = vld [vmem:[#allocation5 + $0x8] sm:$0xff]  ;;  %v148_v3 = vmul.f32 %v121_v0, %v121_v0  ;;  %v139_v4 = vmul.f32 %v118_v1, %v118_v1  ;;  %v119_v5 = vld [vmem:[#allocation2 + $0x8] sm:$0xff]  ;;  %v125_v8 = vld [vmem:[#allocation7 + $0x8] sm:$0xff]  ;;  %v130_v25 = vmul.f32 %v121_v0, %v118_v1  ;;  %s236_s27 = sshll.u32 %s401_s3, 4  ;;  %s237_s27 = int_to_ptr.vmem [resolvable:$true] %s236_s27 }
  0x4b   :  { %v149_v6 = vmul.f32 %v122_v2, %v122_v2  ;;  %v140_v7 = vmul.f32 %v119_v5, %v119_v5  ;;  %v124_v9 = vld [vmem:[#allocation7] sm:$0xff]  ;;  %v179_v10 = vmul.f32 %v125_v8, %v125_v8  ;;  %v127_v13 = vld [vmem:[#allocation8] sm:$0xff]  ;;  %v129_v20 = vld [vmem:[#allocation8 + $0x10] sm:$0xff]  ;;  %v131_v24 = vmul.f32 %v122_v2, %v119_v5  ;;  %s365_s12 = scalar_lea.vmem %s237_s27, 128  ;;  %p370_p5 = scmp.lt.s32.totalorder %s237_s27, %s237_s27 }
  0x4c   :  { %151 = vadd.xlane.f32.xlu1 %v148_v3  ;;  %142 = vadd.xlane.f32.xlu0 %v139_v4  ;;  %v178_v11 = vmul.f32 %v124_v9, %v124_v9  ;;  %v128_v12 = vld [vmem:[#allocation8 + $0x8] sm:$0xff]  ;;  %v187_v15 = vmul.f32 %v127_v13, %v127_v13  ;;  %v123_v16 = vld [vmem:[#allocation5 + $0x10] sm:$0xff]  ;;  %v126_v21 = vld [vmem:[#allocation7 + $0x10] sm:$0xff]  ;;  %v189_v22 = vmul.f32 %v129_v20, %v129_v20  ;;  %p366_p4 = scmp.ne.s32.totalorder %s237_s27, %s365_s12  ;;  %p371_p6 = scmp.lt.s32.totalorder %s365_s12, %s365_s12 }
  0x4d   :  { %v188_v14 = vmul.f32 %v128_v12, %v128_v12  ;;  %v120_v17 = vld [vmem:[#allocation2 + $0x10] sm:$0xff]  ;;  %v150_v18 = vmul.f32 %v123_v16, %v123_v16  ;;  %v180_v23 = vmul.f32 %v126_v21, %v126_v21  ;;  %v170_v26 = vmul.f32 %v128_v12, %v125_v8 }
  0x4e   :  { %v141_v19 = vmul.f32 %v120_v17, %v120_v17  ;;  %v169_v27 = vmul.f32 %v127_v13, %v124_v9  ;;  %v132_v28 = vmul.f32 %v123_v16, %v120_v17  ;;  %v171_v29 = vmul.f32 %v129_v20, %v126_v21  ;;  %p372_p7 = por %p371_p6, %p370_p5 }
  0x50   :  { %153 = vadd.xlane.f32.xlu1 %v149_v6  ;;  %144 = vadd.xlane.f32.xlu0 %v140_v7  ;;  %p373_p8 = pnand %p372_p7, %p366_p4 }
  0x54   :  { %183 = vadd.xlane.f32.xlu1 %v179_v10  ;;  %181 = vadd.xlane.f32.xlu0 %v178_v11 }
  0x58   :  { %192 = vadd.xlane.f32.xlu1 %v188_v14  ;;  %190 = vadd.xlane.f32.xlu0 %v187_v15 }
  0x5c   :  { %155 = vadd.xlane.f32.xlu1 %v150_v18  ;;  %146 = vadd.xlane.f32.xlu0 %v141_v19 }
  0x60   :  { %194 = vadd.xlane.f32.xlu1 %v189_v22  ;;  %185 = vadd.xlane.f32.xlu0 %v180_v23 }
  0x64   :  { %135 = vadd.xlane.f32.xlu1 %v131_v24  ;;  %133 = vadd.xlane.f32.xlu0 %v130_v25 }
  0x68   :  { %174 = vadd.xlane.f32.xlu1 %v170_v26  ;;  %172 = vadd.xlane.f32.xlu0 %v169_v27 }
  0x6c   :  { %137 = vadd.xlane.f32.xlu0 %v132_v28  ;;  %176 = vadd.xlane.f32.xlu1 %v171_v29 }
  0xd9   :  { %v152_v30 = vpop.xlane.xlu1 %151  ;;  %v143_v31 = vpop.xlane.xlu0 %142 }
  0xda   :  { %v157_v34 = vmul.f32 %v152_v30, %v143_v31 }
  0xdc   :  { %v160_v38 = vmax.f32 %v157_v34, 1e-16 }
  0xdd   :  { %v154_v32 = vpop.xlane.xlu1 %153  ;;  %v145_v33 = vpop.xlane.xlu0 %144 }
  0xde   :  { %v158_v37 = vmul.f32 %v154_v32, %v145_v33  ;;  %265 = vrsqrt.f32 %v160_v38 }
  0xe0   :  { %v161_v43 = vmax.f32 %v158_v37, 1e-16 }
  0xe1   :  { %v184_v35 = vpop.xlane.xlu1 %183  ;;  %v182_v36 = vpop.xlane.xlu0 %181 }
  0xe5   :  { %v193_v39 = vpop.xlane.xlu1 %192  ;;  %v191_v40 = vpop.xlane.xlu0 %190 }
  0xe6   :  { %v197_v41 = vmul.f32 %v193_v39, %v184_v35  ;;  %v196_v42 = vmul.f32 %v191_v40, %v182_v36 }
  0xe8   :  { %v200_v44 = vmax.f32 %v197_v41, 1e-16  ;;  %v199_v45 = vmax.f32 %v196_v42, 1e-16  ;;  %v266_v56 = vpop.eup %265 }
  0xe9   :  { %v156_v46 = vpop.xlane.xlu1 %155  ;;  %v147_v47 = vpop.xlane.xlu0 %146 }
  0xea   :  { %267 = vrsqrt.f32 %v200_v44  ;;  %v159_v48 = vmul.f32 %v156_v46, %v147_v47 }
  0xeb   :  { %269 = vrsqrt.f32 %v199_v45 }
  0xec   :  { %271 = vrsqrt.f32 %v161_v43  ;;  %v162_v49 = vmax.f32 %v159_v48, 1e-16 }
  0xed   :  { %v195_v50 = vpop.xlane.xlu1 %194  ;;  %v186_v51 = vpop.xlane.xlu0 %185 }
  0xee   :  { %v198_v52 = vmul.f32 %v195_v50, %v186_v51  ;;  %273 = vrsqrt.f32 %v162_v49 }
  0xf0   :  { %v201_v53 = vmax.f32 %v198_v52, 1e-16 }
  0xf1   :  { %v136_v54 = vpop.xlane.xlu1 %135  ;;  %v134_v55 = vpop.xlane.xlu0 %133 }
  0xf2   :  { %275 = vrsqrt.f32 %v201_v53  ;;  %v166_v1 = vmul.f32 %v266_v56, %v134_v55 }
  0xf4   :  { %v268_v57 = vpop.eup %267 }
  0xf5   :  { %v270_v58 = vpop.eup %269  ;;  %v175_v59 = vpop.xlane.xlu1 %174 }
  0xf6   :  { %v173_v60 = vpop.xlane.xlu0 %172  ;;  %v272_v61 = vpop.eup %271  ;;  %v206_v62 = vmul.f32 %v268_v57, %v175_v59 }
  0xf7   :  { %v205_v63 = vmul.f32 %v270_v58, %v173_v60  ;;  %v167_v0 = vmul.f32 %v272_v61, %v136_v54 }
  0xf8   :  { %v274_v4 = vpop.eup %273 }
  0xf9   :  { %v209_v2 = vadd.f32 %v206_v62, %v167_v0  ;;  %v208_v3 = vadd.f32 %v205_v63, %v166_v1  ;;  %v177_v6 = vpop.xlane.xlu1 %176 }
  0xfa   :  { %v138_v5 = vpop.xlane.xlu0 %137 }
  0xfb   :  { %v168_v8 = vmul.f32 %v274_v4, %v138_v5  ;;  %v213_v10 = vsel %vm212_vm0, %v208_v3, 0.0  ;;  %v214_v11 = vsel %vm212_vm0, %v209_v2, 0.0 }
  0xfc   :  { %v276_v7 = vpop.eup %275  ;;  %v215_v13 = vadd.f32 %v214_v11, %v213_v10 }
  0xfd   :  { %v207_v9 = vmul.f32 %v276_v7, %v177_v6 }
  0xff   :  { %v210_v12 = vadd.f32 %v207_v9, %v168_v8 }
 0x101   :  { %v216_v14 = vsel %vm212_vm0, %v210_v12, 0.0 }
 0x102   :  { %v217_v15 = vadd.f32 %v216_v14, %v215_v13 }
 0x104   :  { %218 = vadd.xlane.f32.xlu0 %v217_v15 }
 0x191   :  { %v219_v16 = vpop.xlane.xlu0 %218 }
 0x192   :  { %v220_v17 = vrot.slane %v219_v16, 4 }
 0x194   :  { %v221_v18 = vadd.f32 %v220_v17, %v219_v16 }
 0x196   :  { %v222_v19 = vrot.slane %v221_v18, 2 }
 0x198   :  { %v223_v20 = vadd.f32 %v222_v19, %v221_v18 }
 0x19a   :  { %v224_v21 = vrot.slane %v223_v20, 1 }
 0x19c   :  { %v225_v22 = vadd.f32 %v224_v21, %v223_v20 }
 0x19e   :  { %255 = vpush %v225_v22 }
 0x1cf   :  { %s256_s28 = spop %255 }
 0x1d0   :  { %v227_v23 = vstv %s256_s28 }
 0x1d1   :  { %229 = vst [vmem:[#allocation10] sm:$0xff] %v227_v23 }
 0x1d2   :  { %376 = shalt.err (!%p373_p8)
}
 0x1d3   :  { %s377_s14 = scalar_lea.hbm %s517_s4, 128 }
 0x1d4   :  { %p378_p9 = scmp.ne.s32.totalorder %s517_s4, %s377_s14  ;;  %p381_p10 = scmp.lt.u32.totalorder %s377_s14, %s517_s4 }
 0x1d6   :  { %p383_p11 = pnand %p381_p10, %p378_p9 }
 0x1d8   :  { %386 = shalt.err (!%p383_p11)
}
 0x1d9   :  { %239 = dma.vmem_to_hbm [thread:$0]  %s237_s27, 128, %s517_s4, [#allocation4]  }
 0x1da   :  { %393 = dma.done.wait [#allocation4], 128  }
 0x1db   :  { %394 = vsyncadd [#allocation4], 4294967168 }
 0x1dc   :  { %243 = vsyncpa [#allocation3], 1 }
 0x1dd   :  { %244 = vsyncpa [#allocation6], 1 }
 0x1de   :  { %245 = vsyncpa [#allocation9], 1 }
 0x1df   :  { %246 = vsyncpa [#allocation4], 1 }

</bundles_post_ra>
